<compile_context>
chip_gen: v5e
topology: v5e:2x2
jax: 0.10.0
libtpu: 0.0.40
codegen_flags: <defaults>
</compile_context>

<pallas_src>
import functools
import math

import jax
import jax.numpy as jnp
from jax.experimental import pallas as pl
from jax.experimental.pallas import tpu as pltpu

_LANE_BLOCK = 512      # minor (lane) dim of the flattened layout; multiple of 128
_MAX_TILE_ROWS = 1024  # sublane rows per grid step (tile <= 1024x512 f32 = 2 MiB)


def _margin_loss_kernel(lengths_ref, labels_ref, out_ref, *, m_pos, m_neg, alpha):
    # Cast in-kernel (free VPU work) rather than in the wrapper.
    lengths = lengths_ref[...].astype(jnp.float32)
    labels = labels_ref[...].astype(jnp.float32)
    left = jnp.square(jnp.maximum(m_pos - lengths, 0.0))
    right = jnp.square(jnp.maximum(lengths - m_neg, 0.0))
    out = labels * left + alpha * (1.0 - labels) * right
    out_ref[...] = out.astype(out_ref.dtype)


def margin_loss(lengths, labels, m_pos=0.9, m_neg=0.1, alpha=0.5):
    assert lengths.shape == labels.shape, "lengths/labels must have the same shape"
    orig_shape = lengths.shape
    out_dtype = jnp.result_type(lengths.dtype, labels.dtype)

    n = math.prod(orig_shape)
    # Lane-dense flattened layout: (rows_padded, _LANE_BLOCK)
    rows = -(-n // _LANE_BLOCK)                      # ceil
    tm = min(_MAX_TILE_ROWS, ((rows + 7) // 8) * 8)  # sublane-aligned tile height
    rows_padded = -(-rows // tm) * tm
    n_padded = rows_padded * _LANE_BLOCK
    pad = n_padded - n

    lengths_2d = jnp.pad(lengths.reshape(-1), (0, pad)).reshape(rows_padded, _LANE_BLOCK)
    labels_2d = jnp.pad(labels.reshape(-1), (0, pad)).reshape(rows_padded, _LANE_BLOCK)

    kernel = functools.partial(
        _margin_loss_kernel, m_pos=float(m_pos), m_neg=float(m_neg), alpha=float(alpha)
    )

    grid = (rows_padded // tm,)
    block = (tm, _LANE_BLOCK)
    idx = lambda i: (i, 0)

    out_2d = pl.pallas_call(
        kernel,
        out_shape=jax.ShapeDtypeStruct((rows_padded, _LANE_BLOCK), out_dtype),
        grid=grid,
        in_specs=[
            pl.BlockSpec(block, idx),
            pl.BlockSpec(block, idx),
        ],
        out_specs=pl.BlockSpec(block, idx),
        compiler_params=pltpu.CompilerParams(
            dimension_semantics=("parallel",),
            vmem_limit_bytes=32 * 1024 * 1024,
        ),
    )(lengths_2d, labels_2d)

    return out_2d.reshape(-1)[:n].reshape(orig_shape)


def _reference(lengths, labels, m_pos=0.9, m_neg=0.1, alpha=0.5):
    lengths = lengths.astype(jnp.float32)
    labels = labels.astype(jnp.float32)
    left = jnp.maximum(m_pos - lengths, 0.0) ** 2
    right = jnp.maximum(lengths - m_neg, 0.0) ** 2
    return labels * left + alpha * (1.0 - labels) * right


if __name__ == "__main__":
    key = jax.random.PRNGKey(0)

    # Case 1: small shape consistent with the module (batch, num_classes).
    k1, k2, k3, k4 = jax.random.split(key, 4)
    batch, num_classes = 8, 16
    lengths = jax.random.uniform(k1, (batch, num_classes), dtype=jnp.float32)
    labels = jax.nn.one_hot(
        jax.random.randint(k2, (batch,), 0, num_classes), num_classes
    ).astype(jnp.float32)

    out = jax.block_until_ready(margin_loss(lengths, labels, 0.9, 0.1, 0.5))
    ref = _reference(lengths, labels, 0.9, 0.1, 0.5)
    assert out.shape == (batch, num_classes)
    assert out.dtype == jnp.float32
    assert jnp.allclose(out, ref, atol=1e-6), "mismatch vs reference (small case)"

    # Case 2: moderate shape to exercise padding + multi-step grid (grid=2).
    b2, c2 = 1100, 640
    lengths2 = jax.random.uniform(k3, (b2, c2), dtype=jnp.float32)
    labels2 = jax.nn.one_hot(
        jax.random.randint(k4, (b2,), 0, c2), c2
    ).astype(jnp.float32)

    out2 = jax.block_until_ready(margin_loss(lengths2, labels2, 0.9, 0.1, 0.5))
    ref2 = _reference(lengths2, labels2, 0.9, 0.1, 0.5)
    assert out2.shape == (b2, c2)
    assert jnp.allclose(out2, ref2, atol=1e-6), "mismatch vs reference (grid case)"

    print("KERNEL_OK")
</pallas_src>

<mosaic_0001>
module attributes {stable_mosaic.version = 11 : i64} {
  func.func @_margin_loss_kernel(%arg0: i32, %arg1: memref<8x512xf32, #tpu.memory_space<vmem>>, %arg2: memref<8x512xf32, #tpu.memory_space<vmem>>, %arg3: memref<8x512xf32, #tpu.memory_space<vmem>>) attributes {dimension_semantics = [#tpu.dimension_semantics<parallel>], iteration_bounds = array<i64: 1>, scalar_prefetch = 0 : i64, scratch_operands = 0 : i64, tpu.core_type = #tpu.core_type<tc>, window_params = [{transform_indices = @transform_0, window_bounds = array<i64: 8, 512>}, {transform_indices = @transform_1, window_bounds = array<i64: 8, 512>}, {transform_indices = @transform_2, window_bounds = array<i64: 8, 512>}]} {
    %c0 = arith.constant 0 : index
    %c0_0 = arith.constant 0 : index
    %0 = vector.load %arg1[%c0, %c0_0] : memref<8x512xf32, #tpu.memory_space<vmem>>, vector<8x512xf32>
    %c0_1 = arith.constant 0 : index
    %c0_2 = arith.constant 0 : index
    %1 = vector.load %arg2[%c0_1, %c0_2] : memref<8x512xf32, #tpu.memory_space<vmem>>, vector<8x512xf32>
    %cst = arith.constant 0.899999976 : f32
    %2 = vector.broadcast %cst : f32 to vector<8x512xf32>
    %3 = arith.subf %2, %0 : vector<8x512xf32>
    %cst_3 = arith.constant 0.000000e+00 : f32
    %4 = vector.broadcast %cst_3 : f32 to vector<8x512xf32>
    %5 = arith.maximumf %3, %4 : vector<8x512xf32>
    %6 = arith.mulf %5, %5 : vector<8x512xf32>
    %cst_4 = arith.constant 1.000000e-01 : f32
    %7 = vector.broadcast %cst_4 : f32 to vector<8x512xf32>
    %8 = arith.subf %0, %7 : vector<8x512xf32>
    %cst_5 = arith.constant 0.000000e+00 : f32
    %9 = vector.broadcast %cst_5 : f32 to vector<8x512xf32>
    %10 = arith.maximumf %8, %9 : vector<8x512xf32>
    %11 = arith.mulf %10, %10 : vector<8x512xf32>
    %12 = arith.mulf %1, %6 : vector<8x512xf32>
    %cst_6 = arith.constant 1.000000e+00 : f32
    %13 = vector.broadcast %cst_6 : f32 to vector<8x512xf32>
    %14 = arith.subf %13, %1 : vector<8x512xf32>
    %cst_7 = arith.constant 5.000000e-01 : f32
    %15 = vector.broadcast %cst_7 : f32 to vector<8x512xf32>
    %16 = arith.mulf %15, %14 : vector<8x512xf32>
    %17 = arith.mulf %16, %11 : vector<8x512xf32>
    %18 = arith.addf %12, %17 : vector<8x512xf32>
    %c0_8 = arith.constant 0 : index
    %c0_9 = arith.constant 0 : index
    %19 = vector.load %arg3[%c0_8, %c0_9] : memref<8x512xf32, #tpu.memory_space<vmem>>, vector<8x512xf32>
    tpu.vector_store %arg3[%c0_8, %c0_9], %18 {strides = array<i32>} : memref<8x512xf32, #tpu.memory_space<vmem>>, vector<8x512xf32>,
    return
  }
  func.func @transform_0(%arg0: i32) -> (i32, i32) {
    %c0_i32 = arith.constant 0 : i32
    %c0_i32_0 = arith.constant 0 : i32
    return %arg0, %c0_i32 : i32, i32
  }
  func.func @transform_1(%arg0: i32) -> (i32, i32) {
    %c0_i32 = arith.constant 0 : i32
    %c0_i32_0 = arith.constant 0 : i32
    return %arg0, %c0_i32 : i32, i32
  }
  func.func @transform_2(%arg0: i32) -> (i32, i32) {
    %c0_i32 = arith.constant 0 : i32
    %c0_i32_0 = arith.constant 0 : i32
    return %arg0, %c0_i32 : i32, i32
  }
}

</mosaic_0001>

<bundles_post_ra>
// kernel: tpu_custom_call.1
= control target key start
LH: loop header
LB: loop body
LE: loop exit
PB: predicated region body
PF: predicated region fallthrough
CT: control target
= control target key end

     0   :  { %7 = vsyncpa [#allocation3], 0  ;;  %s226_s0 = inlined_call_operand.hbm [shape: f32[8,512], index: 0, kind: input, shape index: {}]   ;;  %s227_s1 = inlined_call_operand.hbm [shape: f32[8,512], index: 1, kind: input, shape index: {}]   ;;  %s228_s2 = inlined_call_operand.hbm [shape: f32[8,512], index: 2, kind: output, shape index: {}]  }
   0x1   :  { %8 = vsyncpa [#allocation6], 0 }
   0x2   :  { %9 = vsyncpa [#allocation4], 0  ;;  %s15_s11 = sshll.u32 %s226_s0, 4  ;;  %s199_s12 = smov [#allocation2]   ;;  %s16_s11 = int_to_ptr.hbm [resolvable:$true] %s15_s11 }
   0x3   :  { %s17_s13 = sshll.u32 %s199_s12, 4  ;;  %s26_s16 = sshll.u32 %s227_s1, 4  ;;  %s18_s13 = int_to_ptr.vmem [resolvable:$true] %s17_s13  ;;  %s27_s16 = int_to_ptr.hbm [resolvable:$true] %s26_s16 }
   0x4   :  { %20 = dma.hbm_to_vmem [thread:$0]  %s16_s11, 512, %s18_s13, [#allocation3]  }
   0x5   :  { %s200_s17 = smov [#allocation5]  }
   0x6   :  { %s28_s18 = sshll.u32 %s200_s17, 4  ;;  %s29_s18 = int_to_ptr.vmem [resolvable:$true] %s28_s18 }
   0x7   :  { %31 = dma.hbm_to_vmem [thread:$0]  %s27_s16, 512, %s29_s18, [#allocation6]  }
   0x8   :  { %193 = dma.done.wait [#allocation3], 512  }
   0x9   :  { %194 = vsyncadd [#allocation3], 4294966784 }
   0xa   :  { %195 = dma.done.wait [#allocation6], 512  }
   0xb   :  { %196 = vsyncadd [#allocation6], 4294966784  ;;  %v40_v0 = vld [vmem:[#allocation2] sm:$0xff]  ;;  %v41_v2 = vld [vmem:[#allocation2 + $0x8] sm:$0xff]  ;;  %s201_s0 = smov [#allocation7]   ;;  %s103_s21 = sshll.u32 %s228_s2, 4  ;;  %s104_s21 = int_to_ptr.hbm [resolvable:$true] %s103_s21 }
   0xc   :  { %v44_v1 = vld [vmem:[#allocation5] sm:$0xff]  ;;  %v48_v3 = vsub.f32 0.9, %v40_v0  ;;  %v114_v4 = vadd.f32 -0.1, %v40_v0  ;;  %v45_v6 = vld [vmem:[#allocation5 + $0x8] sm:$0xff] }
   0xd   :  { %v76_v5 = vsub.f32 1.0, %v44_v1  ;;  %v49_v7 = vsub.f32 0.9, %v41_v2  ;;  %v115_v8 = vadd.f32 -0.1, %v41_v2  ;;  %v77_v9 = vsub.f32 1.0, %v45_v6 }
   0xe   :  { %v42_v10 = vld [vmem:[#allocation2 + $0x10] sm:$0xff]  ;;  %v52_v11 = vmax.f32 %v48_v3, 0.0  ;;  %v64_v12 = vmax.f32 %v114_v4, 0.0  ;;  %v43_v20 = vld [vmem:[#allocation2 + $0x18] sm:$0xff]  ;;  %s101_s1 = sshll.u32 %s201_s0, 4  ;;  %s102_s1 = int_to_ptr.vmem [resolvable:$true] %s101_s1 }
   0xf   :  { %v80_v13 = vmul.f32 0.5, %v76_v5  ;;  %v46_v14 = vld [vmem:[#allocation5 + $0x10] sm:$0xff]  ;;  %v50_v15 = vsub.f32 0.9, %v42_v10  ;;  %v53_v16 = vmax.f32 %v49_v7, 0.0  ;;  %v65_v17 = vmax.f32 %v115_v8, 0.0 }
  0x10   :  { %v81_v18 = vmul.f32 0.5, %v77_v9  ;;  %v116_v19 = vadd.f32 -0.1, %v42_v10  ;;  %v56_v21 = vmul.f32 %v52_v11, %v52_v11  ;;  %v68_v22 = vmul.f32 %v64_v12, %v64_v12  ;;  %v47_v28 = vld [vmem:[#allocation5 + $0x18] sm:$0xff] }
  0x11   :  { %v54_v23 = vmax.f32 %v50_v15, 0.0  ;;  %v78_v24 = vsub.f32 1.0, %v46_v14  ;;  %v57_v25 = vmul.f32 %v53_v16, %v53_v16  ;;  %v69_v26 = vmul.f32 %v65_v17, %v65_v17 }
  0x12   :  { %v66_v27 = vmax.f32 %v116_v19, 0.0  ;;  %v51_v29 = vsub.f32 0.9, %v43_v20  ;;  %v72_v30 = vmul.f32 %v56_v21, %v44_v1  ;;  %v84_v31 = vmul.f32 %v80_v13, %v68_v22 }
  0x13   :  { %v58_v32 = vmul.f32 %v54_v23, %v54_v23  ;;  %v82_v33 = vmul.f32 0.5, %v78_v24  ;;  %v73_v34 = vmul.f32 %v57_v25, %v45_v6  ;;  %v85_v35 = vmul.f32 %v81_v18, %v69_v26 }
  0x14   :  { %v70_v36 = vmul.f32 %v66_v27, %v66_v27  ;;  %v55_v37 = vmax.f32 %v51_v29, 0.0  ;;  %v88_v38 = vadd.f32 %v84_v31, %v72_v30  ;;  %v117_v40 = vadd.f32 -0.1, %v43_v20 }
  0x15   :  { %v74_v39 = vmul.f32 %v58_v32, %v46_v14  ;;  %v79_v41 = vsub.f32 1.0, %v47_v28  ;;  %v89_v42 = vadd.f32 %v85_v35, %v73_v34 }
  0x16   :  { %v86_v43 = vmul.f32 %v82_v33, %v70_v36  ;;  %v59_v44 = vmul.f32 %v55_v37, %v55_v37  ;;  %92 = vst [vmem:[#allocation7] sm:$0xff] %v88_v38  ;;  %v67_v45 = vmax.f32 %v117_v40, 0.0 }
  0x17   :  { %v83_v46 = vmul.f32 0.5, %v79_v41  ;;  %93 = vst [vmem:[#allocation7 + $0x8] sm:$0xff] %v89_v42 }
  0x18   :  { %v90_v47 = vadd.f32 %v86_v43, %v74_v39  ;;  %v71_v48 = vmul.f32 %v67_v45, %v67_v45  ;;  %v75_v49 = vmul.f32 %v59_v44, %v47_v28 }
  0x1a   :  { %94 = vst [vmem:[#allocation7 + $0x10] sm:$0xff] %v90_v47  ;;  %v87_v50 = vmul.f32 %v83_v46, %v71_v48 }
  0x1c   :  { %v91_v51 = vadd.f32 %v87_v50, %v75_v49 }
  0x1e   :  { %95 = vst [vmem:[#allocation7 + $0x18] sm:$0xff] %v91_v51 }
  0x1f   :  { %106 = dma.vmem_to_hbm [thread:$0]  %s102_s1, 512, %s104_s21, [#allocation4]  }
  0x20   :  { %197 = dma.done.wait [#allocation4], 512  }
  0x21   :  { %198 = vsyncadd [#allocation4], 4294966784 }
  0x22   :  { %111 = vsyncpa [#allocation3], 1 }
  0x23   :  { %112 = vsyncpa [#allocation6], 1 }
  0x24   :  { %113 = vsyncpa [#allocation4], 1 }

</bundles_post_ra>
